<compile_context>
chip_gen: v7x
topology: tpu7x:2x2x1
jax: 0.10.0
libtpu: 0.0.40
codegen_flags: <defaults>
</compile_context>

<pallas_src>
import jax
import jax.numpy as jnp
from jax.experimental import pallas as pl
from jax.experimental.pallas import tpu as pltpu

KERNEL = 3  # pool window
STRIDE = 1  # pool stride


def maxpool3x3_kernel(x_ref, o_ref):
    # x_ref: (N, C, H, W) input; o_ref: (N, C, Ho, Wo) output, Ho = H-2, Wo = W-2.
    ho = o_ref.shape[2]
    wo = o_ref.shape[3]

    # H direction (sublane axis): 3-tap max over rows, loaded straight from the ref at
    # row offsets 0 / 1 / 2 so the shift is an address offset, not a value shuffle.
    m = jnp.maximum(
        x_ref[:, :, 0:ho, :],
        jnp.maximum(x_ref[:, :, 1:ho + 1, :], x_ref[:, :, 2:ho + 2, :]),
    )

    # W direction (lane axis): left-anchored 3-tap max over columns.
    out = jnp.maximum(
        m[..., 0:wo],
        jnp.maximum(m[..., 1:wo + 1], m[..., 2:wo + 2]),
    )
    o_ref[...] = out


def maxpool2d_3x3_s1(x):
    N, C, H, W = x.shape
    Ho = (H - KERNEL) // STRIDE + 1
    Wo = (W - KERNEL) // STRIDE + 1
    return pl.pallas_call(
        maxpool3x3_kernel,
        out_shape=jax.ShapeDtypeStruct((N, C, Ho, Wo), x.dtype),
        # No grid: single invocation; whole input+output live in VMEM (~11 KiB total).
        in_specs=[pl.BlockSpec(memory_space=pltpu.MemorySpace.VMEM)],
        out_specs=pl.BlockSpec(memory_space=pltpu.MemorySpace.VMEM),
    )(x)


def maxpool2d_ref(x):
    # Pure-JAX reference with torch.nn.MaxPool2d(3, 1, 0) semantics.
    N, C, H, W = x.shape
    Ho, Wo = H - KERNEL + 1, W - KERNEL + 1
    out = x[:, :, 0:Ho, 0:Wo]
    for dh in range(KERNEL):
        for dw in range(KERNEL):
            out = jnp.maximum(out, x[:, :, dh:dh + Ho, dw:dw + Wo])
    return out


if __name__ == "__main__":
    key = jax.random.PRNGKey(0)
    # Small NCHW input consistent with the module (in_channels=3).
    x = jax.random.normal(key, (2, 3, 16, 16), dtype=jnp.float32)

    out = maxpool2d_3x3_s1(x)
    out = jax.block_until_ready(out)

    ref = maxpool2d_ref(x)
    assert out.shape == (2, 3, 14, 14), out.shape
    assert jnp.allclose(out, ref), "mismatch vs reference"

    print("KERNEL_OK")
</pallas_src>

<mosaic_0001>
module attributes {stable_mosaic.version = 11 : i64} {
  func.func @maxpool3x3_kernel(%arg0: memref<2x3x16x16xf32, #tpu.memory_space<vmem>>, %arg1: memref<2x3x14x14xf32, #tpu.memory_space<vmem>>) attributes {dimension_semantics = [], scalar_prefetch = 0 : i64, scratch_operands = 0 : i64, tpu.core_type = #tpu.core_type<tc>} {
    %c0 = arith.constant 0 : index
    %c0_0 = arith.constant 0 : index
    %c0_1 = arith.constant 0 : index
    %c0_2 = arith.constant 0 : index
    %0 = vector.load %arg0[%c0, %c0_0, %c0_1, %c0_2] : memref<2x3x16x16xf32, #tpu.memory_space<vmem>>, vector<2x3x14x16xf32>
    %c0_3 = arith.constant 0 : index
    %c0_4 = arith.constant 0 : index
    %c1 = arith.constant 1 : index
    %c0_5 = arith.constant 0 : index
    %1 = vector.load %arg0[%c0_3, %c0_4, %c1, %c0_5] : memref<2x3x16x16xf32, #tpu.memory_space<vmem>>, vector<2x3x14x16xf32>
    %c0_6 = arith.constant 0 : index
    %c0_7 = arith.constant 0 : index
    %c2 = arith.constant 2 : index
    %c0_8 = arith.constant 0 : index
    %2 = vector.load %arg0[%c0_6, %c0_7, %c2, %c0_8] : memref<2x3x16x16xf32, #tpu.memory_space<vmem>>, vector<2x3x14x16xf32>
    %3 = arith.maximumf %1, %2 : vector<2x3x14x16xf32>
    %4 = arith.maximumf %0, %3 : vector<2x3x14x16xf32>
    %5 = vector.extract_strided_slice %4 {offsets = [0, 0, 0, 0], sizes = [2, 3, 14, 14], strides = [1, 1, 1, 1]} : vector<2x3x14x16xf32> to vector<2x3x14x14xf32>
    %6 = vector.extract_strided_slice %4 {offsets = [0, 0, 0, 1], sizes = [2, 3, 14, 14], strides = [1, 1, 1, 1]} : vector<2x3x14x16xf32> to vector<2x3x14x14xf32>
    %7 = vector.extract_strided_slice %4 {offsets = [0, 0, 0, 2], sizes = [2, 3, 14, 14], strides = [1, 1, 1, 1]} : vector<2x3x14x16xf32> to vector<2x3x14x14xf32>
    %8 = arith.maximumf %6, %7 : vector<2x3x14x14xf32>
    %9 = arith.maximumf %5, %8 : vector<2x3x14x14xf32>
    %c0_9 = arith.constant 0 : index
    %c0_10 = arith.constant 0 : index
    %c0_11 = arith.constant 0 : index
    %c0_12 = arith.constant 0 : index
    %10 = vector.load %arg1[%c0_9, %c0_10, %c0_11, %c0_12] : memref<2x3x14x14xf32, #tpu.memory_space<vmem>>, vector<2x3x14x14xf32>
    tpu.vector_store %arg1[%c0_9, %c0_10, %c0_11, %c0_12], %9 {strides = array<i32>} : memref<2x3x14x14xf32, #tpu.memory_space<vmem>>, vector<2x3x14x14xf32>,
    return
  }
}

</mosaic_0001>

<bundles_post_ra>
// kernel: tpu_custom_call.1
= control target key start
LH: loop header
LB: loop body
LE: loop exit
PB: predicated region body
PF: predicated region fallthrough
CT: control target
= control target key end

     0   :  { %6 = vsyncpa [#allocation3], 0  ;;  %s249_s6 = smov [#allocation2]   ;;  %s407_s0 = inlined_call_operand.hbm [shape: f32[2,3,16,16], index: 0, kind: input, shape index: {}]   ;;  %s408_s1 = inlined_call_operand.vmem [shape: f32[2,3,14,14], index: 1, kind: output, shape index: {}]  }
   0x1   :  { %s12_s7 = sshll.u32 %s249_s6, 4  ;;  %s225_s10 = scalar_lea.hbm %s407_s0, 1536  ;;  %s13_s7 = int_to_ptr.vmem [resolvable:$true] %s12_s7 }
   0x2   :  { %p226_p0 = scmp.ne.s32.totalorder %s407_s0, %s225_s10  ;;  %p229_p1 = scmp.lt.u32.totalorder %s225_s10, %s407_s0 }
   0x4   :  { %p231_p2 = pnand %p229_p1, %p226_p0 }
   0x6   :  { %234 = shalt.err (!%p231_p2)
}
   0x7   :  { %s235_s15 = scalar_lea.vmem %s13_s7, 1536  ;;  %p240_p4 = scmp.lt.s32.totalorder %s13_s7, %s13_s7 }
   0x8   :  { %p236_p3 = scmp.ne.s32.totalorder %s13_s7, %s235_s15  ;;  %p241_p5 = scmp.lt.s32.totalorder %s235_s15, %s235_s15 }
   0xa   :  { %p242_p6 = por %p241_p5, %p240_p4 }
   0xc   :  { %p243_p7 = pnand %p242_p6, %p236_p3 }
   0xe   :  { %246 = shalt.err (!%p243_p7)
}
   0xf   :  { %s250_s16 = smov 128   ;;  %s251_s17 = smov 8  }
  0x10   :  { %18 = dma.hbm_to_vmem [thread:$0]  %s407_s0, 1536, %s13_s7, [#allocation3], %s250_s16, %s250_s16, %s251_s17  }
  0x11   :  { %247 = dma.done.wait [#allocation3], 1536  }
  0x12   :  { %248 = vsyncadd [#allocation3], 4294965760  ;;  %v22_v0 = vld [vmem:[#allocation2] sm:$0xff]  ;;  %v24_v4 = vld [vmem:[#allocation2 + $0x10] sm:$0xff]  ;;  %s252_s0 = smov 127   ;;  %vm202_vm0 = vcmask 113664  }
  0x13   :  { %v34_v1 = vld [vmem:[#allocation2 + $0x1] sm:$0xff]  ;;  %v36_v5 = vld [vmem:[#allocation2 + $0x11] sm:$0xff]  ;;  %v35_v9 = vld [vmem:[#allocation2 + $0x9] sm:$0x3f]  ;;  %vm204_vm1 = vcmask 111616  }
  0x14   :  { %v46_v2 = vld [vmem:[#allocation2 + $0x2] sm:$0xff]  ;;  %v48_v6 = vld [vmem:[#allocation2 + $0x12] sm:$0xff]  ;;  %v47_v10 = vld [vmem:[#allocation2 + $0xa] sm:$0x3f] }
  0x15   :  { %v58_v3 = vmax.f32 %v34_v1, %v46_v2  ;;  %v60_v7 = vmax.f32 %v36_v5, %v48_v6  ;;  %v23_v8 = vld [vmem:[#allocation2 + $0x8] sm:$0x3f]  ;;  %v59_v12 = vmax.f32 %v35_v9, %v47_v10  ;;  %v25_v13 = vld [vmem:[#allocation2 + $0x18] sm:$0x3f]  ;;  %v26_v26 = vld [vmem:[#allocation2 + $0x20] sm:$0xff] }
  0x16   :  { %v37_v14 = vld [vmem:[#allocation2 + $0x19] sm:$0x3f]  ;;  %v39_v18 = vld [vmem:[#allocation2 + $0x29] sm:$0x3f]  ;;  %v38_v21 = vld [vmem:[#allocation2 + $0x21] sm:$0xff] }
  0x17   :  { %v275_v11 = vmax.f32 %v22_v0, %v58_v3  ;;  %v49_v15 = vld [vmem:[#allocation2 + $0x1a] sm:$0x3f]  ;;  %v277_v16 = vmax.f32 %v24_v4, %v60_v7  ;;  %v51_v19 = vld [vmem:[#allocation2 + $0x2a] sm:$0x3f]  ;;  %v281_v20 = vmax.f32 %v23_v8, %v59_v12  ;;  %v50_v22 = vld [vmem:[#allocation2 + $0x22] sm:$0xff] }
  0x18   :  { %v61_v17 = vmax.f32 %v37_v14, %v49_v15  ;;  %v27_v24 = vld [vmem:[#allocation2 + $0x28] sm:$0x3f]  ;;  %v63_v25 = vmax.f32 %v39_v18, %v51_v19  ;;  %v62_v27 = vmax.f32 %v38_v21, %v50_v22  ;;  %v41_v28 = vld [vmem:[#allocation2 + $0x39] sm:$0x3f]  ;;  %v40_v30 = vld [vmem:[#allocation2 + $0x31] sm:$0xff] }
  0x19   :  { %94 = vrot.lane.b32.xlu0 %v275_v11, %s252_s0  ;;  %98 = vrot.lane.b32.xlu1 %v277_v16, %s252_s0  ;;  %v53_v29 = vld [vmem:[#allocation2 + $0x3a] sm:$0x3f]  ;;  %v52_v31 = vld [vmem:[#allocation2 + $0x32] sm:$0xff]  ;;  %v42_v37 = vld [vmem:[#allocation2 + $0x41] sm:$0xff] }
  0x1a   :  { %v285_v23 = vmax.f32 %v25_v13, %v61_v17  ;;  %v289_v32 = vmax.f32 %v26_v26, %v62_v27  ;;  %v64_v33 = vmax.f32 %v40_v30, %v52_v31  ;;  %v293_v34 = vmax.f32 %v27_v24, %v63_v25  ;;  %v28_v36 = vld [vmem:[#allocation2 + $0x30] sm:$0xff]  ;;  %v54_v38 = vld [vmem:[#allocation2 + $0x42] sm:$0xff]  ;;  %v29_v39 = vld [vmem:[#allocation2 + $0x38] sm:$0x3f] }
  0x1b   :  { %v65_v35 = vmax.f32 %v41_v28, %v53_v29  ;;  %v43_v40 = vld [vmem:[#allocation2 + $0x49] sm:$0x3f]  ;;  %v66_v43 = vmax.f32 %v42_v37, %v54_v38  ;;  %v30_v46 = vld [vmem:[#allocation2 + $0x40] sm:$0xff]  ;;  %v44_v47 = vld [vmem:[#allocation2 + $0x51] sm:$0xff] }
  0x1c   :  { %v55_v41 = vld [vmem:[#allocation2 + $0x4a] sm:$0x3f]  ;;  %v297_v42 = vmax.f32 %v28_v36, %v64_v33  ;;  %v56_v48 = vld [vmem:[#allocation2 + $0x52] sm:$0xff]  ;;  %v57_v51 = vld [vmem:[#allocation2 + $0x5a] sm:$0x3f] }
  0x1d   :  { %96 = vrot.lane.b32.xlu0 %v281_v20, %s252_s0  ;;  %100 = vrot.lane.b32.xlu1 %v285_v23, %s252_s0  ;;  %v301_v44 = vmax.f32 %v29_v39, %v65_v35  ;;  %v67_v45 = vmax.f32 %v43_v40, %v55_v41  ;;  %v31_v49 = vld [vmem:[#allocation2 + $0x48] sm:$0x3f]  ;;  %v45_v50 = vld [vmem:[#allocation2 + $0x59] sm:$0x3f]  ;;  %v305_v52 = vmax.f32 %v30_v46, %v66_v43  ;;  %v32_v56 = vld [vmem:[#allocation2 + $0x50] sm:$0xff] }
  0x1e   :  { %v68_v53 = vmax.f32 %v44_v47, %v56_v48  ;;  %v69_v55 = vmax.f32 %v45_v50, %v57_v51  ;;  %v33_v57 = vld [vmem:[#allocation2 + $0x58] sm:$0x3f] }
  0x1f   :  { %v309_v54 = vmax.f32 %v31_v49, %v67_v45 }
  0x20   :  { %v313_v58 = vmax.f32 %v32_v56, %v68_v53  ;;  %v317_v59 = vmax.f32 %v33_v57, %v69_v55 }
  0x21   :  { %102 = vrot.lane.b32.xlu0 %v289_v32, %s252_s0  ;;  %104 = vrot.lane.b32.xlu1 %v293_v34, %s252_s0 }
  0x25   :  { %106 = vrot.lane.b32.xlu0 %v297_v42, %s252_s0  ;;  %108 = vrot.lane.b32.xlu1 %v301_v44, %s252_s0 }
  0x29   :  { %110 = vrot.lane.b32.xlu0 %v305_v52, %s252_s0  ;;  %112 = vrot.lane.b32.xlu1 %v309_v54, %s252_s0 }
  0x2d   :  { %114 = vrot.lane.b32.xlu0 %v313_v58, %s252_s0  ;;  %116 = vrot.lane.b32.xlu1 %v317_v59, %s252_s0 }
  0x8b   :  { %v95_v60 = vpop.permute.xlu0 %94  ;;  %v99_v62 = vpop.permute.xlu1 %98 }
  0x8c   :  { %v130_v61 = vmax.f32 %v275_v11, %v95_v60  ;;  %v132_v63 = vmax.f32 %v277_v16, %v99_v62 }
  0x8e   :  { %154 = vrot.lane.b32.xlu0 %v130_v61, %s252_s0 }
  0x8f   :  { %v97_v0 = vpop.permute.xlu0 %96  ;;  %v101_v2 = vpop.permute.xlu1 %100 }
  0x90   :  { %v131_v1 = vmax.f32 %v281_v20, %v97_v0  ;;  %v133_v3 = vmax.f32 %v285_v23, %v101_v2 }
  0x92   :  { %158 = vrot.lane.b32.xlu0 %v132_v63, %s252_s0  ;;  %156 = vrot.lane.b32.xlu1 %v131_v1, %s252_s0 }
  0x93   :  { %v103_v4 = vpop.permute.xlu0 %102  ;;  %v105_v5 = vpop.permute.xlu1 %104 }
  0x94   :  { %v134_v6 = vmax.f32 %v289_v32, %v103_v4  ;;  %v135_v7 = vmax.f32 %v293_v34, %v105_v5 }
  0x96   :  { %160 = vrot.lane.b32.xlu1 %v133_v3, %s252_s0  ;;  %162 = vrot.lane.b32.xlu0 %v134_v6, %s252_s0 }
  0x97   :  { %v107_v8 = vpop.permute.xlu0 %106  ;;  %v109_v9 = vpop.permute.xlu1 %108 }
  0x98   :  { %v136_v10 = vmax.f32 %v297_v42, %v107_v8  ;;  %v137_v12 = vmax.f32 %v301_v44, %v109_v9 }
  0x9a   :  { %164 = vrot.lane.b32.xlu1 %v135_v7, %s252_s0  ;;  %166 = vrot.lane.b32.xlu0 %v136_v10, %s252_s0 }
  0x9b   :  { %v111_v13 = vpop.permute.xlu0 %110  ;;  %v113_v14 = vpop.permute.xlu1 %112 }
  0x9c   :  { %v138_v15 = vmax.f32 %v305_v52, %v111_v13  ;;  %v139_v17 = vmax.f32 %v309_v54, %v113_v14 }
  0x9e   :  { %168 = vrot.lane.b32.xlu1 %v137_v12, %s252_s0  ;;  %170 = vrot.lane.b32.xlu0 %v138_v15, %s252_s0 }
  0x9f   :  { %v115_v18 = vpop.permute.xlu0 %114  ;;  %v117_v19 = vpop.permute.xlu1 %116 }
  0xa0   :  { %v140_v21 = vmax.f32 %v313_v58, %v115_v18  ;;  %v141_v22 = vmax.f32 %v317_v59, %v117_v19 }
  0xa2   :  { %172 = vrot.lane.b32.xlu1 %v139_v17, %s252_s0  ;;  %174 = vrot.lane.b32.xlu0 %v140_v21, %s252_s0 }
  0xa6   :  { %176 = vrot.lane.b32.xlu1 %v141_v22, %s252_s0 }
 0x100   :  { %v155_v24 = vpop.permute.xlu0 %154 }
 0x101   :  { %v190_v25 = vmax.f32 %v275_v11, %v155_v24 }
 0x103   :  { %203 = vst.msk [vmem:[%s408_s1] sm:$0xff] %vm202_vm0, %v190_v25 }
 0x104   :  { %v157_v26 = vpop.permute.xlu1 %156  ;;  %v159_v27 = vpop.permute.xlu0 %158 }
 0x105   :  { %v191_v28 = vmax.f32 %v281_v20, %v157_v26  ;;  %v192_v29 = vmax.f32 %v277_v16, %v159_v27 }
 0x107   :  { %205 = vst.msk [vmem:[%s408_s1 + $0x8] sm:$0x3f] %vm204_vm1, %v191_v28 }
 0x108   :  { %206 = vst.msk [vmem:[%s408_s1 + $0x10] sm:$0xff] %vm202_vm0, %v192_v29  ;;  %v161_v11 = vpop.permute.xlu1 %160  ;;  %v163_v30 = vpop.permute.xlu0 %162 }
 0x109   :  { %v193_v31 = vmax.f32 %v285_v23, %v161_v11  ;;  %v194_v33 = vmax.f32 %v289_v32, %v163_v30 }
 0x10b   :  { %207 = vst.msk [vmem:[%s408_s1 + $0x18] sm:$0x3f] %vm204_vm1, %v193_v31 }
 0x10c   :  { %208 = vst.msk [vmem:[%s408_s1 + $0x20] sm:$0xff] %vm202_vm0, %v194_v33  ;;  %v165_v16 = vpop.permute.xlu1 %164  ;;  %v167_v20 = vpop.permute.xlu0 %166 }
 0x10d   :  { %v195_v35 = vmax.f32 %v293_v34, %v165_v16  ;;  %v196_v36 = vmax.f32 %v297_v42, %v167_v20 }
 0x10f   :  { %209 = vst.msk [vmem:[%s408_s1 + $0x28] sm:$0x3f] %vm204_vm1, %v195_v35 }
 0x110   :  { %210 = vst.msk [vmem:[%s408_s1 + $0x30] sm:$0xff] %vm202_vm0, %v196_v36  ;;  %v169_v23 = vpop.permute.xlu1 %168  ;;  %v171_v32 = vpop.permute.xlu0 %170 }
 0x111   :  { %v197_v37 = vmax.f32 %v301_v44, %v169_v23  ;;  %v198_v38 = vmax.f32 %v305_v52, %v171_v32 }
 0x113   :  { %211 = vst.msk [vmem:[%s408_s1 + $0x38] sm:$0x3f] %vm204_vm1, %v197_v37 }
 0x114   :  { %212 = vst.msk [vmem:[%s408_s1 + $0x40] sm:$0xff] %vm202_vm0, %v198_v38  ;;  %v173_v34 = vpop.permute.xlu1 %172  ;;  %v175_v39 = vpop.permute.xlu0 %174 }
 0x115   :  { %v199_v40 = vmax.f32 %v309_v54, %v173_v34  ;;  %v200_v41 = vmax.f32 %v313_v58, %v175_v39 }
 0x117   :  { %213 = vst.msk [vmem:[%s408_s1 + $0x48] sm:$0x3f] %vm204_vm1, %v199_v40 }
 0x118   :  { %214 = vst.msk [vmem:[%s408_s1 + $0x50] sm:$0xff] %vm202_vm0, %v200_v41  ;;  %v177_v42 = vpop.permute.xlu1 %176 }
 0x119   :  { %v201_v43 = vmax.f32 %v317_v59, %v177_v42 }
 0x11b   :  { %215 = vst.msk [vmem:[%s408_s1 + $0x58] sm:$0x3f] %vm204_vm1, %v201_v43 }
 0x11c   :  { %220 = vsyncpa [#allocation3], 1 }

</bundles_post_ra>
